<compile_context>
chip_gen: v7x
topology: tpu7x:2x2x1
jax: 0.10.0
libtpu: 0.0.40
codegen_flags: <defaults>
</compile_context>

<pallas_src>
import functools

import jax
import jax.numpy as jnp
from jax.experimental import pallas as pl
from jax.experimental.pallas import tpu as pltpu


def _channel_interaction_kernel(x_ref, w1_ref, b1_ref, w2_ref, b2_ref, o_ref,
                                acc_ref, *, inv_hw, hw, hw_tile, needs_mask):
    # x_ref : (n_tile, C, hw_tile)      w1_ref: (C, C4)   b1_ref: (1, C4)
    # w2_ref: (C4, C)                   b2_ref: (1, C)
    # o_ref : (n_tile, C) f32           acc_ref: (n_tile, C, 1) f32 pool sum
    k = pl.program_id(1)
    last = pl.num_programs(1) - 1

    @pl.when(k == 0)
    def _init():
        acc_ref[...] = jnp.zeros_like(acc_ref)

    def accumulate(xf):
        # keepdims: result stays in the natural (C on sublanes) layout, so the
        # steady state is one lane-reduce + elementwise add, no relayout.
        acc_ref[...] += jnp.sum(xf, axis=-1, keepdims=True)

    if needs_mask:
        # Interior blocks: pure load + reduce-accumulate (hides under the DMA).
        @pl.when(k != last)
        def _steady():
            accumulate(x_ref[...].astype(jnp.float32))

        # Only the final (partial) HW block pays the iota/compare/select.
        @pl.when(k == last)
        def _tail():
            xf = x_ref[...].astype(jnp.float32)
            valid = hw - k * hw_tile
            lane = jax.lax.broadcasted_iota(jnp.int32, xf.shape, dimension=2)
            accumulate(jnp.where(lane < valid, xf, 0.0))
    else:
        accumulate(x_ref[...].astype(jnp.float32))

    @pl.when(k == last)
    def _finalize():
        nt, C = acc_ref.shape[0], acc_ref.shape[1]
        # Single relayout to a lane-dense (nt, C) row right before the dots.
        pooled = acc_ref[...].reshape(nt, C) * inv_hw                    # AdaptiveAvgPool2d(1)
        h = jnp.dot(pooled, w1_ref[...],
                    preferred_element_type=jnp.float32) + b1_ref[...]    # Conv2d 1x1 (C -> C/4)
        # Exact (erf-based) GELU, matching PyTorch's default nn.GELU().
        h = h * 0.5 * (1.0 + jax.lax.erf(h * 0.7071067811865476))
        y = jnp.dot(h, w2_ref[...],
                    preferred_element_type=jnp.float32) + b2_ref[...]    # Conv2d 1x1 (C/4 -> C)
        o_ref[...] = jax.nn.sigmoid(y).astype(o_ref.dtype)               # Sigmoid


def _physical_vmem_bytes():
    """Per-core VMEM capacity (v7x: 64 MiB, v5e/v6e: 128 MiB)."""
    try:
        v = int(pltpu.get_tpu_info().vmem_capacity_bytes)
        if v > 0:
            return v
    except Exception:
        pass
    return 64 << 20  # conservative fallback: smallest per-TC VMEM (v7x)


def _pick_n_tile(N, per_image_bytes, x_budget_bytes, target_bytes=4 << 20):
    """Largest divisor of N s.t. the double-buffered block fits the budget and
    the per-block x data reaches ~target_bytes (amortizes per-step overhead)."""
    best = 1
    for nt in range(1, N + 1):
        if N % nt:
            continue
        if nt > 1 and 2 * nt * per_image_bytes > x_budget_bytes:
            break
        best = nt
        if nt * per_image_bytes >= target_bytes:
            break
    return best


def _pick_hw_tile(HW, C, n_tile, itemsize, x_budget_bytes):
    """Full-HW contiguous block if its double buffer fits; else largest
    128-multiple lane tile that fits (no artificial max-tile cap)."""
    if HW <= 128 or 2 * n_tile * C * HW * itemsize <= x_budget_bytes:
        return HW  # full last dim: single contiguous DMA, no tail mask
    lanes = (x_budget_bytes // (2 * n_tile * C * itemsize)) // 128 * 128
    lanes = max(128, int(lanes))
    return int(min(lanes, (HW // 128) * 128))


def channel_interaction(x, w1, b1, w2, b2, *, hw_tile=None, n_tile=None):
    """x: (N, C, H, W) float32/bfloat16; returns (N, C, 1, 1) in x.dtype.

    w1: (C, C//4)  -- squeezed, transposed Conv2d weight of the first 1x1 conv
    w2: (C//4, C)  -- squeezed, transposed Conv2d weight of the second 1x1 conv
    """
    N, C, H, W = x.shape
    C4 = w1.shape[1]
    assert w1.shape == (C, C4) and w2.shape == (C4, C)
    assert b1.size == C4 and b2.size == C

    HW = H * W
    itemsize = jnp.dtype(x.dtype).itemsize

    # ---- generation-aware VMEM plan ------------------------------------
    phys_vmem = _physical_vmem_bytes()
    plan_budget = int(phys_vmem * 0.6)           # leave headroom for compiler scratch
    # Weights/biases stay resident (constant index_map) but Pallas still holds
    # 2 pipeline buffers per input; account for them (important on v5e).
    fixed_bytes = 2 * 4 * (C * C4 + C4 * C + C4 + C)
    x_budget = max(1 << 20, plan_budget - fixed_bytes - (1 << 20))

    per_image_bytes = C * HW * itemsize
    if n_tile is None:
        n_tile = _pick_n_tile(N, per_image_bytes, x_budget)
    assert N % n_tile == 0, "n_tile must divide N"
    if hw_tile is None:
        hw_tile = _pick_hw_tile(HW, C, n_tile, itemsize, x_budget)
    hw_tile = min(int(hw_tile), HW)
    assert hw_tile == HW or hw_tile % 128 == 0, \
        "hw_tile must be the full H*W or a multiple of 128"

    x_block_bytes = n_tile * C * hw_tile * itemsize
    est_bytes = 2 * x_block_bytes + fixed_bytes + 4 * n_tile * C * 4
    vmem_limit = int(min(phys_vmem - (2 << 20),
                         max(est_bytes + (4 << 20), 32 << 20)))

    # ---- launch ----------------------------------------------------------
    x3 = x.reshape(N, C, HW)
    w1f = w1.astype(jnp.float32)
    w2f = w2.astype(jnp.float32)
    b1f = b1.reshape(1, C4).astype(jnp.float32)
    b2f = b2.reshape(1, C).astype(jnp.float32)

    n_hw = pl.cdiv(HW, hw_tile)
    needs_mask = (HW % hw_tile) != 0

    kernel = functools.partial(
        _channel_interaction_kernel,
        inv_hw=float(1.0 / HW), hw=HW, hw_tile=hw_tile, needs_mask=needs_mask)

    out = pl.pallas_call(
        kernel,
        out_shape=jax.ShapeDtypeStruct((N, C), jnp.float32),
        grid=(N // n_tile, n_hw),
        in_specs=[
            # Streamed activations: tiled over batch blocks and the HW axis.
            pl.BlockSpec((n_tile, C, hw_tile), lambda n, k: (n, 0, k)),
            # Weights/biases: constant block index -> DMA'd once, VMEM-resident.
            pl.BlockSpec((C, C4), lambda n, k: (0, 0)),
            pl.BlockSpec((1, C4), lambda n, k: (0, 0)),
            pl.BlockSpec((C4, C), lambda n, k: (0, 0)),
            pl.BlockSpec((1, C), lambda n, k: (0, 0)),
        ],
        out_specs=pl.BlockSpec((n_tile, C), lambda n, k: (n, 0)),
        scratch_shapes=[pltpu.VMEM((n_tile, C, 1), jnp.float32)],
        compiler_params=pltpu.CompilerParams(
            dimension_semantics=("parallel", "arbitrary"),
            vmem_limit_bytes=vmem_limit),
    )(x3, w1f, b1f, w2f, b2f)

    return out.astype(x.dtype).reshape(N, C, 1, 1)


def _reference(x, w1, b1, w2, b2):
    N, C, H, W = x.shape
    pooled = jnp.mean(x.reshape(N, C, H * W), axis=-1)
    h = pooled @ w1 + b1
    h = h * 0.5 * (1.0 + jax.lax.erf(h / jnp.sqrt(2.0)))
    return jax.nn.sigmoid(h @ w2 + b2).reshape(N, C, 1, 1)


if __name__ == "__main__":
    key = jax.random.PRNGKey(0)
    kx, kw1, kb1, kw2, kb2, kx2, kx3 = jax.random.split(key, 7)

    # Small shapes consistent with the module: dim must be divisible by 4.
    N, C, H, W = 2, 16, 16, 16
    C4 = C // 4

    x = jax.random.normal(kx, (N, C, H, W), dtype=jnp.float32)
    # PyTorch Conv2d weight has shape (out, in, 1, 1); we store the squeezed,
    # transposed (in, out) form used by the in-kernel matmul.
    w1 = jax.random.normal(kw1, (C, C4), dtype=jnp.float32) * 0.1
    b1 = jax.random.normal(kb1, (C4,), dtype=jnp.float32) * 0.1
    w2 = jax.random.normal(kw2, (C4, C), dtype=jnp.float32) * 0.1
    b2 = jax.random.normal(kb2, (C,), dtype=jnp.float32) * 0.1

    y_ref = _reference(x, w1, b1, w2, b2)

    # Case 1: auto plan -> full-HW contiguous block, adaptive n_tile.
    y_auto = channel_interaction(x, w1, b1, w2, b2)
    # Case 2: forced small tiles -> multi-step accumulator path, 2 batch blocks.
    y_tiled = channel_interaction(x, w1, b1, w2, b2, hw_tile=128, n_tile=1)
    jax.block_until_ready((y_auto, y_tiled))
    assert y_auto.shape == (N, C, 1, 1)
    assert jnp.allclose(y_auto, y_ref, atol=1e-5), "auto-plan mismatch vs reference"
    assert jnp.allclose(y_tiled, y_ref, atol=1e-5), "tiled mismatch vs reference"

    # Case 3: HW not a multiple of the tile -> masked tail block (HW = 300).
    x2 = jax.random.normal(kx2, (N, C, 15, 20), dtype=jnp.float32)
    y2 = channel_interaction(x2, w1, b1, w2, b2, hw_tile=128)
    y2_ref = _reference(x2, w1, b1, w2, b2)
    jax.block_until_ready(y2)
    assert jnp.allclose(y2, y2_ref, atol=1e-5), "masked-tail mismatch vs reference"

    # Case 4: N=4 with n_tile=2 batch blocks + multi-step HW -> checks the
    # accumulator re-init at k==0 of every batch block.
    x3 = jax.random.normal(kx3, (4, C, H, W), dtype=jnp.float32)
    y3 = channel_interaction(x3, w1, b1, w2, b2, hw_tile=128, n_tile=2)
    y3_ref = _reference(x3, w1, b1, w2, b2)
    jax.block_until_ready(y3)
    assert jnp.allclose(y3, y3_ref, atol=1e-5), "batched-block mismatch vs reference"

    # Case 5: bf16 activations (halved HBM read traffic, f32 in-kernel accumulate).
    xb = x.astype(jnp.bfloat16)
    yb = channel_interaction(xb, w1, b1, w2, b2)
    yb_ref = _reference(xb.astype(jnp.float32), w1, b1, w2, b2)
    jax.block_until_ready(yb)
    assert jnp.allclose(yb.astype(jnp.float32), yb_ref, atol=5e-3), "bf16 mismatch vs reference"

    print("KERNEL_OK")
</pallas_src>

<mosaic_0001>
module attributes {stable_mosaic.version = 11 : i64} {
  func.func @_channel_interaction_kernel(%arg0: i32, %arg1: i32, %arg2: memref<2x16x256xf32, #tpu.memory_space<vmem>>, %arg3: memref<16x4xf32, #tpu.memory_space<vmem>>, %arg4: memref<1x4xf32, #tpu.memory_space<vmem>>, %arg5: memref<4x16xf32, #tpu.memory_space<vmem>>, %arg6: memref<1x16xf32, #tpu.memory_space<vmem>>, %arg7: memref<2x16xf32, #tpu.memory_space<vmem>>, %arg8: memref<2x16x1xf32, #tpu.memory_space<vmem>>) attributes {dimension_semantics = [#tpu.dimension_semantics<parallel>, #tpu.dimension_semantics<arbitrary>], iteration_bounds = array<i64: 1, 1>, scalar_prefetch = 0 : i64, scratch_operands = 1 : i64, tpu.core_type = #tpu.core_type<tc>, window_params = [{transform_indices = @transform_0, window_bounds = array<i64: 2, 16, 256>}, {pipeline_mode = #tpu.pipeline_mode<synchronous>, transform_indices = @transform_1, window_bounds = array<i64: 16, 4>}, {pipeline_mode = #tpu.pipeline_mode<synchronous>, transform_indices = @transform_2, window_bounds = array<i64: 1, 4>}, {pipeline_mode = #tpu.pipeline_mode<synchronous>, transform_indices = @transform_3, window_bounds = array<i64: 4, 16>}, {pipeline_mode = #tpu.pipeline_mode<synchronous>, transform_indices = @transform_4, window_bounds = array<i64: 1, 16>}, {transform_indices = @transform_5, window_bounds = array<i64: 2, 16>}]} {
    %c0_i32 = arith.constant 0 : i32
    %0 = arith.cmpi eq, %arg1, %c0_i32 : i32
    %1 = arith.extui %0 : i1 to i32
    %c0_i32_0 = arith.constant 0 : i32
    %2 = arith.cmpi ne, %1, %c0_i32_0 : i32
    scf.if %2 {
      %cst_11 = arith.constant 0.000000e+00 : f32
      %12 = vector.broadcast %cst_11 : f32 to vector<2x16x1xf32>
      %c0_12 = arith.constant 0 : index
      %c0_13 = arith.constant 0 : index
      %c0_14 = arith.constant 0 : index
      %13 = vector.load %arg8[%c0_12, %c0_13, %c0_14] : memref<2x16x1xf32, #tpu.memory_space<vmem>>, vector<2x16x1xf32>
      tpu.vector_store %arg8[%c0_12, %c0_13, %c0_14], %12 {strides = array<i32>} : memref<2x16x1xf32, #tpu.memory_space<vmem>>, vector<2x16x1xf32>,
    } else {
    }
    %c0 = arith.constant 0 : index
    %c0_1 = arith.constant 0 : index
    %c0_2 = arith.constant 0 : index
    %3 = vector.load %arg2[%c0, %c0_1, %c0_2] : memref<2x16x256xf32, #tpu.memory_space<vmem>>, vector<2x16x256xf32>
    %c0_3 = arith.constant 0 : index
    %c0_4 = arith.constant 0 : index
    %c0_5 = arith.constant 0 : index
    %4 = vector.load %arg8[%c0_3, %c0_4, %c0_5] : memref<2x16x1xf32, #tpu.memory_space<vmem>>, vector<2x16x1xf32>
    %cst = arith.constant dense<0.000000e+00> : vector<2x16xf32>
    %5 = vector.multi_reduction <add>, %3, %cst [2] : vector<2x16x256xf32> to vector<2x16xf32>
    %6 = vector.shape_cast %5 : vector<2x16xf32> to vector<2x16x1xf32>
    %7 = arith.addf %4, %6 : vector<2x16x1xf32>
    %c0_6 = arith.constant 0 : index
    %c0_7 = arith.constant 0 : index
    %c0_8 = arith.constant 0 : index
    %8 = vector.load %arg8[%c0_6, %c0_7, %c0_8] : memref<2x16x1xf32, #tpu.memory_space<vmem>>, vector<2x16x1xf32>
    tpu.vector_store %arg8[%c0_6, %c0_7, %c0_8], %7 {strides = array<i32>} : memref<2x16x1xf32, #tpu.memory_space<vmem>>, vector<2x16x1xf32>,
    %c0_i32_9 = arith.constant 0 : i32
    %9 = arith.cmpi eq, %arg1, %c0_i32_9 : i32
    %10 = arith.extui %9 : i1 to i32
    %c0_i32_10 = arith.constant 0 : i32
    %11 = arith.cmpi ne, %10, %c0_i32_10 : i32
    scf.if %11 {
      %c0_11 = arith.constant 0 : index
      %c0_12 = arith.constant 0 : index
      %c0_13 = arith.constant 0 : index
      %12 = vector.load %arg8[%c0_11, %c0_12, %c0_13] : memref<2x16x1xf32, #tpu.memory_space<vmem>>, vector<2x16x1xf32>
      %13 = vector.shape_cast %12 : vector<2x16x1xf32> to vector<2x16xf32>
      %cst_14 = arith.constant 3.906250e-03 : f32
      %14 = vector.broadcast %cst_14 : f32 to vector<2x16xf32>
      %15 = arith.mulf %13, %14 : vector<2x16xf32>
      %c0_15 = arith.constant 0 : index
      %c0_16 = arith.constant 0 : index
      %16 = vector.load %arg3[%c0_15, %c0_16] : memref<16x4xf32, #tpu.memory_space<vmem>>, vector<16x4xf32>
      %cst_17 = arith.constant dense<0.000000e+00> : vector<2x4xf32>
      %17 = tpu.matmul %15, %16, %cst_17 {dimension_numbers = #tpu.dot_dimension_numbers<[1], [0], [0], [1], [0, 0, 1, 1], [], []>} : vector<2x16xf32>, vector<16x4xf32>, vector<2x4xf32> -> vector<2x4xf32>
      %c0_18 = arith.constant 0 : index
      %c0_19 = arith.constant 0 : index
      %18 = vector.load %arg4[%c0_18, %c0_19] : memref<1x4xf32, #tpu.memory_space<vmem>>, vector<1x4xf32>
      %19 = vector.broadcast %18 : vector<1x4xf32> to vector<2x4xf32>
      %20 = arith.addf %17, %19 : vector<2x4xf32>
      %cst_20 = arith.constant 5.000000e-01 : f32
      %21 = vector.broadcast %cst_20 : f32 to vector<2x4xf32>
      %22 = arith.mulf %20, %21 : vector<2x4xf32>
      %cst_21 = arith.constant 0.707106769 : f32
      %23 = vector.broadcast %cst_21 : f32 to vector<2x4xf32>
      %24 = arith.mulf %20, %23 : vector<2x4xf32>
      %25 = math.erf %24 : vector<2x4xf32>
      %cst_22 = arith.constant 1.000000e+00 : f32
      %26 = vector.broadcast %cst_22 : f32 to vector<2x4xf32>
      %27 = arith.addf %26, %25 : vector<2x4xf32>
      %28 = arith.mulf %22, %27 : vector<2x4xf32>
      %c0_23 = arith.constant 0 : index
      %c0_24 = arith.constant 0 : index
      %29 = vector.load %arg5[%c0_23, %c0_24] : memref<4x16xf32, #tpu.memory_space<vmem>>, vector<4x16xf32>
      %cst_25 = arith.constant dense<0.000000e+00> : vector<2x16xf32>
      %30 = tpu.matmul %28, %29, %cst_25 {dimension_numbers = #tpu.dot_dimension_numbers<[1], [0], [0], [1], [0, 0, 1, 1], [], []>} : vector<2x4xf32>, vector<4x16xf32>, vector<2x16xf32> -> vector<2x16xf32>
      %c0_26 = arith.constant 0 : index
      %c0_27 = arith.constant 0 : index
      %31 = vector.load %arg6[%c0_26, %c0_27] : memref<1x16xf32, #tpu.memory_space<vmem>>, vector<1x16xf32>
      %32 = vector.broadcast %31 : vector<1x16xf32> to vector<2x16xf32>
      %33 = arith.addf %30, %32 : vector<2x16xf32>
      %34 = arith.negf %33 : vector<2x16xf32>
      %35 = math.exp %34 : vector<2x16xf32>
      %cst_28 = arith.constant 1.000000e+00 : f32
      %36 = vector.broadcast %cst_28 : f32 to vector<2x16xf32>
      %37 = arith.addf %36, %35 : vector<2x16xf32>
      %38 = arith.divf %36, %37 : vector<2x16xf32>
      %c0_29 = arith.constant 0 : index
      %c0_30 = arith.constant 0 : index
      %39 = vector.load %arg7[%c0_29, %c0_30] : memref<2x16xf32, #tpu.memory_space<vmem>>, vector<2x16xf32>
      tpu.vector_store %arg7[%c0_29, %c0_30], %38 {strides = array<i32>} : memref<2x16xf32, #tpu.memory_space<vmem>>, vector<2x16xf32>,
    } else {
    }
    return
  }
  func.func @transform_0(%arg0: i32, %arg1: i32) -> (i32, i32, i32) {
    %c0_i32 = arith.constant 0 : i32
    %c0_i32_0 = arith.constant 0 : i32
    return %arg0, %c0_i32, %arg1 : i32, i32, i32
  }
  func.func @transform_1(%arg0: i32, %arg1: i32) -> (i32, i32) {
    %c0_i32 = arith.constant 0 : i32
    %c0_i32_0 = arith.constant 0 : i32
    %c0_i32_1 = arith.constant 0 : i32
    return %c0_i32, %c0_i32_0 : i32, i32
  }
  func.func @transform_2(%arg0: i32, %arg1: i32) -> (i32, i32) {
    %c0_i32 = arith.constant 0 : i32
    %c0_i32_0 = arith.constant 0 : i32
    %c0_i32_1 = arith.constant 0 : i32
    return %c0_i32, %c0_i32_0 : i32, i32
  }
  func.func @transform_3(%arg0: i32, %arg1: i32) -> (i32, i32) {
    %c0_i32 = arith.constant 0 : i32
    %c0_i32_0 = arith.constant 0 : i32
    %c0_i32_1 = arith.constant 0 : i32
    return %c0_i32, %c0_i32_0 : i32, i32
  }
  func.func @transform_4(%arg0: i32, %arg1: i32) -> (i32, i32) {
    %c0_i32 = arith.constant 0 : i32
    %c0_i32_0 = arith.constant 0 : i32
    %c0_i32_1 = arith.constant 0 : i32
    return %c0_i32, %c0_i32_0 : i32, i32
  }
  func.func @transform_5(%arg0: i32, %arg1: i32) -> (i32, i32) {
    %c0_i32 = arith.constant 0 : i32
    %c0_i32_0 = arith.constant 0 : i32
    return %arg0, %c0_i32 : i32, i32
  }
}

</mosaic_0001>

<bundles_post_ra>
// kernel: tpu_custom_call.1
= control target key start
LH: loop header
LB: loop body
LE: loop exit
PB: predicated region body
PF: predicated region fallthrough
CT: control target
= control target key end

     0   :  { %10 = vsyncpa [#allocation4], 0  ;;  %s499_s0 = inlined_call_operand.hbm [shape: f32[2,16,256], index: 0, kind: input, shape index: {}]   ;;  %s500_s1 = inlined_call_operand.vmem [shape: f32[16,4], index: 1, kind: input, shape index: {}]   ;;  %s501_s2 = inlined_call_operand.vmem [shape: f32[1,4], index: 2, kind: input, shape index: {}]   ;;  %s502_s3 = inlined_call_operand.vmem [shape: f32[4,16], index: 3, kind: input, shape index: {}]   ;;  %s503_s4 = inlined_call_operand.vmem [shape: f32[1,16], index: 4, kind: input, shape index: {}]   ;;  %s504_s5 = inlined_call_operand.hbm [shape: f32[2,16], index: 5, kind: output, shape index: {}]  }
   0x1   :  { %11 = vsyncpa [#allocation5], 0  ;;  %s414_s18 = smov [#allocation3]   ;;  %s366_s22 = scalar_lea.hbm %s499_s0, 1024 }
   0x2   :  { %s17_s19 = sshll.u32 %s414_s18, 4  ;;  %p367_p0 = scmp.ne.s32.totalorder %s499_s0, %s366_s22  ;;  %s18_s19 = int_to_ptr.vmem [resolvable:$true] %s17_s19 }
   0x3   :  { %p370_p1 = scmp.lt.u32.totalorder %s366_s22, %s499_s0 }
   0x5   :  { %p372_p2 = pnand %p370_p1, %p367_p0 }
   0x7   :  { %375 = shalt.err (!%p372_p2)
}
   0x8   :  { %s376_s27 = scalar_lea.vmem %s18_s19, 1024  ;;  %p381_p4 = scmp.lt.s32.totalorder %s18_s19, %s18_s19 }
   0x9   :  { %p377_p3 = scmp.ne.s32.totalorder %s18_s19, %s376_s27  ;;  %p382_p5 = scmp.lt.s32.totalorder %s376_s27, %s376_s27 }
   0xb   :  { %p383_p6 = por %p382_p5, %p381_p4 }
   0xd   :  { %p384_p7 = pnand %p383_p6, %p377_p3 }
   0xf   :  { %387 = shalt.err (!%p384_p7)
}
  0x10   :  { %s415_s28 = smov 256   ;;  %s416_s29 = smov 16  }
  0x11   :  { %23 = dma.hbm_to_vmem [thread:$0]  %s499_s0, 1024, %s18_s19, [#allocation4], %s415_s28, %s415_s28, %s416_s29  }
  0x12   :  { %410 = dma.done.wait [#allocation4], 1024  }
  0x13   :  { %411 = vsyncadd [#allocation4], 4294966272  ;;  %vm39_vm0 = vcmask 7168   ;;  %v417_v0 = vmov 0.0   ;;  %v44_v1 = vld [vmem:[#allocation3] sm:$0xff]  ;;  %v45_v2 = vld [vmem:[#allocation3 + $0x8] sm:$0xff]  ;;  %v113_v38 = vlaneseq }
  0x14   :  { %40 = vst.msk [vmem:[#allocation2] sm:$0xff] %vm39_vm0, %v417_v0  ;;  %41 = vst.msk [vmem:[#allocation2 + $0x8] sm:$0xff] %vm39_vm0, %v417_v0  ;;  %342 = vmatprep.subr.mxu1 %v417_v0  ;;  %v46_v3 = vld [vmem:[#allocation3 + $0x10] sm:$0xff]  ;;  %v56_v4 = vadd.f32 %v45_v2, %v44_v1  ;;  %v47_v5 = vld [vmem:[#allocation3 + $0x18] sm:$0xff]  ;;  %v418_v13 = vmov 0   ;;  %v419_v37 = vmov 0.0|0.0  }
  0x15   :  { %42 = vst.msk [vmem:[#allocation2 + $0x10] sm:$0xff] %vm39_vm0, %v417_v0  ;;  %43 = vst.msk [vmem:[#allocation2 + $0x18] sm:$0xff] %vm39_vm0, %v417_v0  ;;  %v48_v6 = vld [vmem:[#allocation3 + $0x20] sm:$0xff]  ;;  %v49_v7 = vld [vmem:[#allocation3 + $0x28] sm:$0xff]  ;;  %v59_v11 = vadd.f32 %v47_v5, %v46_v3  ;;  %358 = vset.pattern.permute.xlu0 %v418_v13  ;;  %359 = vset.pattern.permute.xlu1 %v418_v13  ;;  %vm420_vm1 = vmmov 0   ;;  %v114_v39 = vand.u32 127, %v113_v38 }
  0x16   :  { %v62_v8 = vadd.f32 %v49_v7, %v48_v6  ;;  %v50_v9 = vld [vmem:[#allocation3 + $0x30] sm:$0xff]  ;;  %v51_v10 = vld [vmem:[#allocation3 + $0x38] sm:$0xff]  ;;  %57 = vadd.xlane.f32.xlu0 %v56_v4  ;;  %v88_v34 = vld [vmem:[%s500_s1] sm:$0xff]  ;;  %347 = vmatprep.subr.bf16.mxu0 %v419_v37  ;;  %v116_v42 = vshrl.u32 %v113_v38, 7  ;;  %vm124_vm2 = vcmask 130112   ;;  %vm135_vm3 = vcmask 1041409  }
  0x17   :  { %v65_v12 = vadd.f32 %v51_v10, %v50_v9  ;;  %v89_v35 = vld [vmem:[%s500_s1 + $0x8] sm:$0xff]  ;;  %339 = vmatprep.mubr.msk.f32.mxu0 %vm420_vm1, %v417_v0  ;;  %344 = vmatprep.mubr.msk.f32.mxu1 %vm420_vm1, %v417_v0  ;;  %v119_v40 = vadd.s32 4294967288, %v114_v39  ;;  %vm137_vm4 = vcmask 130048   ;;  %v215_v55 = vld [vmem:[%s502_s3] sm:$0xf]  ;;  %vm227_vm5 = vcmask 1043456  }
  0x18   :  { %63 = vadd.xlane.f32.xlu1 %v62_v8  ;;  %v348_v36 = vpack.c.bf16 %v89_v35, %v88_v34  ;;  %v117_v45 = vsub.s32 %v114_v39, %v116_v42  ;;  %343 = vmatpush3.msk.msra.mxu1 %vm227_vm5, %v215_v55  ;;  %v324_v56 = vld [vmem:[%s501_s2] ss:$0 sm:$0xff]  ;;  %vm223_vm6 = vcmask 31744   ;;  %s421_s2 = smov [#allocation6]   ;;  %vm307_vm7 = vcmask 123904  }
  0x19   :  { %v122_v43 = vsub.s32 %v119_v40, %v116_v42  ;;  %v326_v1 = vld [vmem:[%s503_s4] ss:$0 sm:$0xff]  ;;  %s315_s3 = sshll.u32 %s421_s2, 4  ;;  %s316_s3 = int_to_ptr.vmem [resolvable:$true] %s315_s3 }
  0x1a   :  { %60 = vadd.xlane.f32.xlu0 %v59_v11  ;;  %349 = vmatpush3.bf16.msra.mxu0 %v348_v36  ;;  %s388_s15 = scalar_lea.vmem %s316_s3, 32  ;;  %p393_p9 = scmp.lt.s32.totalorder %s316_s3, %s316_s3 }
  0x1b   :  { %v52_v14 = vld [vmem:[#allocation2] sm:$0xff]  ;;  %v53_v19 = vld [vmem:[#allocation2 + $0x8] sm:$0xff]  ;;  %p389_p8 = scmp.ne.s32.totalorder %s316_s3, %s388_s15  ;;  %p394_p10 = scmp.lt.s32.totalorder %s388_s15, %s388_s15 }
  0x1c   :  { %66 = vadd.xlane.f32.xlu1 %v65_v12  ;;  %v54_v15 = vld [vmem:[#allocation2 + $0x10] sm:$0xff]  ;;  %v55_v21 = vld [vmem:[#allocation2 + $0x18] sm:$0xff] }
  0x1d   :  { %p395_p11 = por %p394_p10, %p393_p9 }
  0x1f   :  { %p396_p12 = pnand %p395_p11, %p389_p8 }
  0xa3   :  { %v58_v16 = vpop.xlane.xlu0 %57 }
  0xa4   :  { %v68_v17 = vadd.f32 %v58_v16, %v52_v14 }
  0xa5   :  { %v64_v18 = vpop.xlane.xlu1 %63 }
  0xa6   :  { %v70_v20 = vadd.f32 %v64_v18, %v54_v15  ;;  %73 = vst.msk [vmem:[#allocation2] sm:$0xff] %vm39_vm0, %v68_v17 }
  0xa7   :  { %v61_v22 = vpop.xlane.xlu0 %60 }
  0xa8   :  { %75 = vst.msk [vmem:[#allocation2 + $0x10] sm:$0xff] %vm39_vm0, %v70_v20  ;;  %v69_v23 = vadd.f32 %v61_v22, %v53_v19 }
  0xa9   :  { %v67_v24 = vpop.xlane.xlu1 %66 }
  0xaa   :  { %v71_v25 = vadd.f32 %v67_v24, %v55_v21  ;;  %74 = vst.msk [vmem:[#allocation2 + $0x8] sm:$0xff] %vm39_vm0, %v69_v23 }
  0xac   :  { %76 = vst.msk [vmem:[#allocation2 + $0x18] sm:$0xff] %vm39_vm0, %v71_v25 }
  0xad   :  { %v80_v26 = vld [vmem:[#allocation2] sm:$0xff] }
  0xae   :  { %v84_v27 = vmul.f32 0.00390625, %v80_v26 }
  0xaf   :  { %v82_v29 = vld [vmem:[#allocation2 + $0x10] sm:$0xff] }
  0xb0   :  { %102 = vperm.xlu0 %358, %v84_v27   ;;  %v86_v31 = vmul.f32 0.00390625, %v82_v29 }
  0xb1   :  { %v81_v28 = vld [vmem:[#allocation2 + $0x8] sm:$0xff] }
  0xb2   :  { %v85_v30 = vmul.f32 0.00390625, %v81_v28 }
  0xb3   :  { %v83_v32 = vld [vmem:[#allocation2 + $0x18] sm:$0xff] }
  0xb4   :  { %105 = vperm.xlu1 %359, %v85_v30   ;;  %v87_v33 = vmul.f32 0.00390625, %v83_v32 }
  0xb8   :  { %108 = vperm.xlu1 %359, %v86_v31  }
  0xbc   :  { %111 = vperm.xlu1 %359, %v87_v33  }
 0x12f   :  { %v103_v46 = vpop.permute.xlu0 %102 }
 0x130   :  { %v118_v49 = vrot.slane %v103_v46, %v117_v45 }
 0x133   :  { %v106_v41 = vpop.permute.xlu1 %105 }
 0x134   :  { %v123_v47 = vrot.slane %v106_v41, %v122_v43 }
 0x136   :  { %v125_v52 = vsel %vm124_vm2, %v123_v47, %v118_v49 }
 0x137   :  { %v109_v44 = vpop.permute.xlu1 %108 }
 0x138   :  { %v129_v50 = vrot.slane %v109_v44, %v117_v45 }
 0x13b   :  { %v112_v48 = vpop.permute.xlu1 %111 }
 0x13c   :  { %v133_v51 = vrot.slane %v112_v48, %v122_v43 }
 0x13e   :  { %v134_v53 = vsel %vm124_vm2, %v133_v51, %v129_v50 }
 0x13f   :  { %v136_v54 = vsel %vm135_vm3, %v134_v53, %v125_v52 }
 0x140   :  { %340 = vmatmul.mubr.msk.f32.vlgmr.msra.gmra.mrb[0].mxu0 %vm137_vm4, %v136_v54 }
 0x213   :  { %v206_v57 = vpop.f32.mrb[0].mxu0 }
 0x214   :  { %v207_v58 = vadd.f32 %v324_v56, %v206_v57  ;;  %v341_v59 = vpop.f32.mrb[1].mxu0 }
 0x216   :  { %v211_v60 = vmul.f32 0.70710677, %v207_v58  ;;  %v210_v62 = vmul.f32 0.5, %v207_v58 }
 0x218   :  { %360 = verf.f32 %v211_v60 }
 0x222   :  { %v361_v61 = vpop.eup %360 }
 0x223   :  { %v213_v63 = vadd.f32 1.0, %v361_v61 }
 0x225   :  { %v214_v0 = vmul.f32 %v213_v63, %v210_v62 }
 0x227   :  { %345 = vmatmul.mubr.msk.f32.vlgmr.msra.gmra.mrb[0].mxu1 %vm223_vm6, %v214_v0 }
 0x2fa   :  { %v297_v2 = vpop.f32.mrb[0].mxu1 }
 0x2fb   :  { %v298_v3 = vadd.f32 %v326_v1, %v297_v2  ;;  %v346_v4 = vpop.f32.mrb[1].mxu1 }
 0x2fd   :  { %v329_v5 = vmul.f32 -1.442695, %v298_v3 }
 0x2ff   :  { %362 = vpow2.f32 %v329_v5 }
 0x309   :  { %v363_v6 = vpop.eup %362 }
 0x30a   :  { %v304_v7 = vadd.f32 1.0, %v363_v6 }
 0x30c   :  { %364 = vrcp.f32 %v304_v7 }
 0x316   :  { %v365_v8 = vpop.eup %364 }
 0x317   :  { %308 = vst.msk [vmem:[#allocation6] sm:$0x3] %vm307_vm7, %v365_v8 }
 0x318   :  { %399 = shalt.err (!%p396_p12)
}
 0x319   :  { %s400_s17 = scalar_lea.hbm %s504_s5, 32 }
 0x31a   :  { %p401_p13 = scmp.ne.s32.totalorder %s504_s5, %s400_s17  ;;  %p404_p0 = scmp.lt.u32.totalorder %s400_s17, %s504_s5 }
 0x31c   :  { %p406_p1 = pnand %p404_p0, %p401_p13 }
 0x31e   :  { %409 = shalt.err (!%p406_p1)
}
 0x31f   :  { %318 = dma.vmem_to_hbm [thread:$0]  %s316_s3, 32, %s504_s5, [#allocation5]  }
 0x320   :  { %412 = dma.done.wait [#allocation5], 32  }
 0x321   :  { %413 = vsyncadd [#allocation5], 4294967264 }
 0x322   :  { %322 = vsyncpa [#allocation4], 1 }
 0x323   :  { %323 = vsyncpa [#allocation5], 1 }

</bundles_post_ra>
